<compile_context>
chip_gen: v7x
topology: tpu7x:2x2x1
jax: 0.10.0
libtpu: 0.0.40
codegen_flags: <defaults>
</compile_context>

<pallas_src>
import functools

import jax
import jax.numpy as jnp
from jax.experimental import pallas as pl
from jax.experimental.pallas import tpu as pltpu

LANE = 128     # vreg lane width (last dim)
SUBLANE = 8    # vreg sublane width (second-to-last dim)


def _round_up(x, m):
    return (x + m - 1) // m * m


def _mlp_kernel(x_ref, slab_ref, o_ref, *, n_layers, batch_rows):
    # x_ref:    [batch_rows, LANE]               input, zero beyond (batch, in_0)
    # slab_ref: [n_layers, batch_rows+LANE, LANE]
    #            rows [0, batch_rows)             : bias_i pre-broadcast to batch rows
    #            rows [batch_rows, batch_rows+128): weight_i [in_i, out_i] zero-padded
    # o_ref:    [batch_rows, LANE]               final pre-activation (zero-padded lanes)
    h = x_ref[...]
    y = h
    for i in range(n_layers):                     # static unroll (few layers)
        b = slab_ref[i, :batch_rows, :]           # [batch_rows, LANE]  pure VALU add
        w = slab_ref[i, batch_rows:, :]           # [LANE, LANE]        MXU operand
        y = jnp.dot(h, w, preferred_element_type=jnp.float32) + b
        if i < n_layers - 1:
            h = jnp.maximum(y, 0.0)               # ReLU only on hidden layers
    o_ref[...] = y.astype(o_ref.dtype)


def _pack_params(params, batch_rows):
    """Pack all (w, b) into one [n_layers, batch_rows + LANE, LANE] f32 slab.

    Per layer: bias pre-broadcast to batch rows (zero beyond out_i lanes),
    followed by the weight zero-padded to a full [LANE, LANE] tile.
    """
    blocks = []
    for w, b in params:
        in_i, out_i = w.shape
        bias_blk = jnp.zeros((batch_rows, LANE), jnp.float32)
        bias_blk = bias_blk.at[:, :out_i].set(
            jnp.broadcast_to(b.reshape(1, out_i).astype(jnp.float32), (batch_rows, out_i)))
        w_blk = jnp.zeros((LANE, LANE), jnp.float32)
        w_blk = w_blk.at[:in_i, :out_i].set(w.astype(jnp.float32))
        blocks.append(jnp.concatenate([bias_blk, w_blk], axis=0))
    return jnp.stack(blocks, axis=0)


@jax.jit
def _net_forward_jit(x, params):
    n_layers = len(params)
    assert n_layers >= 1
    batch, in_f = x.shape
    out_f = params[-1][0].shape[1]
    for w, _ in params:
        # TODO(synk): tile K/N and add a grid for widths > 128.
        assert w.shape[0] <= LANE and w.shape[1] <= LANE

    batch_rows = _round_up(batch, SUBLANE)

    # Zero-pad x to a full (batch_rows, LANE) tile so every layer runs at lane
    # width 128; padded lanes/rows stay exactly zero through dot/bias/ReLU.
    x_pad = jnp.zeros((batch_rows, LANE), jnp.float32).at[:batch, :in_f].set(
        x.astype(jnp.float32))
    slab = _pack_params(params, batch_rows)

    flops = 2 * batch * sum(int(w.shape[0]) * int(w.shape[1]) for w, _ in params)
    bytes_accessed = (x_pad.size + slab.size + batch_rows * LANE) * 4

    kernel = functools.partial(_mlp_kernel, n_layers=n_layers, batch_rows=batch_rows)
    y_pad = pl.pallas_call(
        kernel,
        out_shape=jax.ShapeDtypeStruct((batch_rows, LANE), jnp.float32),
        in_specs=[pl.BlockSpec(memory_space=pltpu.MemorySpace.VMEM),
                  pl.BlockSpec(memory_space=pltpu.MemorySpace.VMEM)],
        out_specs=pl.BlockSpec(memory_space=pltpu.MemorySpace.VMEM),
        cost_estimate=pl.CostEstimate(flops=flops, transcendentals=0,
                                      bytes_accessed=bytes_accessed),
    )(x_pad, slab)

    return y_pad[:batch, :out_f].astype(x.dtype)


def net_forward(params, x):
    """Exact semantics of Net.forward: ReLU after every hidden layer; the
    returned value is the final layer's pre-activation."""
    return _net_forward_jit(x, tuple(params))


def init_net_params(key, widths):
    """Deterministic init matching nn.Linear's default: U(-1/sqrt(in), 1/sqrt(in)).

    Returns list of (w, b) with w: [in, out] (pre-transposed for x @ w), b: [1, out].
    """
    params = []
    for w_in, w_out in zip(widths[:-1], widths[1:]):
        key, k_w, k_b = jax.random.split(key, 3)
        bound = 1.0 / jnp.sqrt(jnp.float32(w_in))
        w = jax.random.uniform(k_w, (w_in, w_out), jnp.float32, -bound, bound)
        b = jax.random.uniform(k_b, (1, w_out), jnp.float32, -bound, bound)
        params.append((w, b))
    return params


def net_forward_ref(params, x):
    """Pure-JAX reference."""
    h = x
    for i, (w, b) in enumerate(params):
        y = h @ w + b[0]
        if i == len(params) - 1:
            return y
        h = jnp.maximum(y, 0.0)
    return h


if __name__ == "__main__":
    widths = [16, 32, 32, 8]   # Net(widths=[16, 32, 32, 8]) with default nonlin=relu
    batch = 8

    key = jax.random.PRNGKey(0)
    key, k_x = jax.random.split(key)
    x = jax.random.normal(k_x, (batch, widths[0]), jnp.float32)

    params = init_net_params(key, widths)

    out = net_forward(params, x)
    out = jax.block_until_ready(out)

    ref = net_forward_ref(params, x)
    assert out.shape == (batch, widths[-1])
    assert jnp.allclose(out, ref, atol=1e-5, rtol=1e-5)

    print("KERNEL_OK")
</pallas_src>

<mosaic_0001>
module attributes {stable_mosaic.version = 11 : i64} {
  func.func @_mlp_kernel(%arg0: memref<8x128xf32, #tpu.memory_space<vmem>>, %arg1: memref<3x136x128xf32, #tpu.memory_space<vmem>>, %arg2: memref<8x128xf32, #tpu.memory_space<vmem>>) attributes {dimension_semantics = [], scalar_prefetch = 0 : i64, scratch_operands = 0 : i64, tpu.core_type = #tpu.core_type<tc>} {
    %c0 = arith.constant 0 : index
    %c0_0 = arith.constant 0 : index
    %0 = vector.load %arg0[%c0, %c0_0] : memref<8x128xf32, #tpu.memory_space<vmem>>, vector<8x128xf32>
    %c0_1 = arith.constant 0 : index
    %c0_2 = arith.constant 0 : index
    %c0_3 = arith.constant 0 : index
    %1 = vector.load %arg1[%c0_1, %c0_2, %c0_3] : memref<3x136x128xf32, #tpu.memory_space<vmem>>, vector<1x8x128xf32>
    %2 = vector.shape_cast %1 : vector<1x8x128xf32> to vector<8x128xf32>
    %c0_4 = arith.constant 0 : index
    %c8 = arith.constant 8 : index
    %c0_5 = arith.constant 0 : index
    %3 = vector.load %arg1[%c0_4, %c8, %c0_5] : memref<3x136x128xf32, #tpu.memory_space<vmem>>, vector<1x128x128xf32>
    %4 = vector.shape_cast %3 : vector<1x128x128xf32> to vector<128x128xf32>
    %cst = arith.constant dense<0.000000e+00> : vector<8x128xf32>
    %5 = tpu.matmul %0, %4, %cst {dimension_numbers = #tpu.dot_dimension_numbers<[1], [0], [0], [1], [0, 0, 1, 1], [], []>} : vector<8x128xf32>, vector<128x128xf32>, vector<8x128xf32> -> vector<8x128xf32>
    %6 = arith.addf %5, %2 : vector<8x128xf32>
    %cst_6 = arith.constant 0.000000e+00 : f32
    %7 = vector.broadcast %cst_6 : f32 to vector<8x128xf32>
    %8 = arith.maximumf %6, %7 : vector<8x128xf32>
    %c1 = arith.constant 1 : index
    %c0_7 = arith.constant 0 : index
    %c0_8 = arith.constant 0 : index
    %9 = vector.load %arg1[%c1, %c0_7, %c0_8] : memref<3x136x128xf32, #tpu.memory_space<vmem>>, vector<1x8x128xf32>
    %10 = vector.shape_cast %9 : vector<1x8x128xf32> to vector<8x128xf32>
    %c1_9 = arith.constant 1 : index
    %c8_10 = arith.constant 8 : index
    %c0_11 = arith.constant 0 : index
    %11 = vector.load %arg1[%c1_9, %c8_10, %c0_11] : memref<3x136x128xf32, #tpu.memory_space<vmem>>, vector<1x128x128xf32>
    %12 = vector.shape_cast %11 : vector<1x128x128xf32> to vector<128x128xf32>
    %cst_12 = arith.constant dense<0.000000e+00> : vector<8x128xf32>
    %13 = tpu.matmul %8, %12, %cst_12 {dimension_numbers = #tpu.dot_dimension_numbers<[1], [0], [0], [1], [0, 0, 1, 1], [], []>} : vector<8x128xf32>, vector<128x128xf32>, vector<8x128xf32> -> vector<8x128xf32>
    %14 = arith.addf %13, %10 : vector<8x128xf32>
    %cst_13 = arith.constant 0.000000e+00 : f32
    %15 = vector.broadcast %cst_13 : f32 to vector<8x128xf32>
    %16 = arith.maximumf %14, %15 : vector<8x128xf32>
    %c2 = arith.constant 2 : index
    %c0_14 = arith.constant 0 : index
    %c0_15 = arith.constant 0 : index
    %17 = vector.load %arg1[%c2, %c0_14, %c0_15] : memref<3x136x128xf32, #tpu.memory_space<vmem>>, vector<1x8x128xf32>
    %18 = vector.shape_cast %17 : vector<1x8x128xf32> to vector<8x128xf32>
    %c2_16 = arith.constant 2 : index
    %c8_17 = arith.constant 8 : index
    %c0_18 = arith.constant 0 : index
    %19 = vector.load %arg1[%c2_16, %c8_17, %c0_18] : memref<3x136x128xf32, #tpu.memory_space<vmem>>, vector<1x128x128xf32>
    %20 = vector.shape_cast %19 : vector<1x128x128xf32> to vector<128x128xf32>
    %cst_19 = arith.constant dense<0.000000e+00> : vector<8x128xf32>
    %21 = tpu.matmul %16, %20, %cst_19 {dimension_numbers = #tpu.dot_dimension_numbers<[1], [0], [0], [1], [0, 0, 1, 1], [], []>} : vector<8x128xf32>, vector<128x128xf32>, vector<8x128xf32> -> vector<8x128xf32>
    %22 = arith.addf %21, %18 : vector<8x128xf32>
    %c0_20 = arith.constant 0 : index
    %c0_21 = arith.constant 0 : index
    %23 = vector.load %arg2[%c0_20, %c0_21] : memref<8x128xf32, #tpu.memory_space<vmem>>, vector<8x128xf32>
    tpu.vector_store %arg2[%c0_20, %c0_21], %22 {strides = array<i32>} : memref<8x128xf32, #tpu.memory_space<vmem>>, vector<8x128xf32>,
    return
  }
}

</mosaic_0001>

<bundles_post_ra>
// kernel: _net_forward_jit.1
= control target key start
LH: loop header
LB: loop body
LE: loop exit
PB: predicated region body
PF: predicated region fallthrough
CT: control target
= control target key end

     0   :  { %v583_v3 = vmov 0.0|0.0   ;;  %vm584_vm0 = vmmov 0   ;;  %v585_v6 = vmov 0.0   ;;  %s800_s0 = inlined_call_operand.vmem [shape: f32[8,128], index: 0, kind: input, shape index: {}]   ;;  %s801_s1 = inlined_call_operand.vmem [shape: f32[3,136,128], index: 1, kind: input, shape index: {}]   ;;  %s802_s2 = inlined_call_operand.hbm [shape: f32[8,128], index: 2, kind: output, shape index: {}]  }
   0x1   :  { %v14_v0 = vld [vmem:[%s801_s1 + $0x8] sm:$0xff]  ;;  %v15_v1 = vld [vmem:[%s801_s1 + $0x10] sm:$0xff]  ;;  %v16_v2 = vld [vmem:[%s801_s1 + $0x18] sm:$0xff]  ;;  %483 = vmatprep.subr.bf16.mxu0 %v583_v3  ;;  %410 = vmatprep.mubr.msk.f32.mxu0 %vm584_vm0, %v585_v6 }
   0x2   :  { %v484_v4 = vpack.c.bf16 %v15_v1, %v14_v0  ;;  %v17_v5 = vld [vmem:[%s801_s1 + $0x20] sm:$0xff]  ;;  %507 = vmatprep.subr.bf16.mxu1 %v583_v3  ;;  %445 = vmatprep.mubr.msk.f32.mxu1 %vm584_vm0, %v585_v6  ;;  %v18_v8 = vld [vmem:[%s801_s1 + $0x28] sm:$0xff]  ;;  %v19_v9 = vld [vmem:[%s801_s1 + $0x30] sm:$0xff] }
   0x3   :  { %v487_v7 = vpack.c.bf16 %v17_v5, %v16_v2  ;;  %v294_v10 = vld [vmem:[%s801_s1 + $0x90] sm:$0xff]  ;;  %v295_v11 = vld [vmem:[%s801_s1 + $0x98] sm:$0xff]  ;;  %v296_v12 = vld [vmem:[%s801_s1 + $0xa0] sm:$0xff]  ;;  %v490_v14 = vpack.c.bf16 %v19_v9, %v18_v8 }
   0x4   :  { %485 = vmatpush3.bf16.msra.mxu0 %v484_v4  ;;  %v297_v13 = vld [vmem:[%s801_s1 + $0xa8] sm:$0xff]  ;;  %v508_v15 = vpack.c.bf16 %v295_v11, %v294_v10  ;;  %v20_v16 = vld [vmem:[%s801_s1 + $0x38] sm:$0xff]  ;;  %v21_v17 = vld [vmem:[%s801_s1 + $0x40] sm:$0xff] }
   0x5   :  { %486 = vmatprep.subr.bf16.mxu0 %v583_v3  ;;  %v511_v18 = vpack.c.bf16 %v297_v13, %v296_v12  ;;  %v298_v19 = vld [vmem:[%s801_s1 + $0xb0] sm:$0xff]  ;;  %v299_v20 = vld [vmem:[%s801_s1 + $0xb8] sm:$0xff] }
   0x6   :  { %509 = vmatpush3.bf16.msra.mxu1 %v508_v15 }
   0x7   :  { %510 = vmatprep.subr.bf16.mxu1 %v583_v3 }
   0x8   :  { %488 = vmatpush3.bf16.msra.mxu0 %v487_v7 }
   0x9   :  { %489 = vmatprep.subr.bf16.mxu0 %v583_v3 }
   0xa   :  { %7 = vsyncpa [#allocation3], 0  ;;  %v493_v21 = vpack.c.bf16 %v21_v17, %v20_v16  ;;  %v22_v22 = vld [vmem:[%s801_s1 + $0x48] sm:$0xff]  ;;  %v23_v23 = vld [vmem:[%s801_s1 + $0x50] sm:$0xff]  ;;  %512 = vmatpush3.bf16.msra.mxu1 %v511_v18  ;;  %v514_v24 = vpack.c.bf16 %v299_v20, %v298_v19  ;;  %s586_s27 = smov [#allocation2]  }
   0xb   :  { %513 = vmatprep.subr.bf16.mxu1 %v583_v3  ;;  %v300_v25 = vld [vmem:[%s801_s1 + $0xc0] sm:$0xff]  ;;  %v301_v26 = vld [vmem:[%s801_s1 + $0xc8] sm:$0xff]  ;;  %v496_v27 = vpack.c.bf16 %v23_v23, %v22_v22  ;;  %v24_v28 = vld [vmem:[%s801_s1 + $0x58] sm:$0xff]  ;;  %s285_s28 = sshll.u32 %s586_s27, 4  ;;  %s286_s28 = int_to_ptr.vmem [resolvable:$true] %s285_s28 }
   0xc   :  { %491 = vmatpush3.bf16.msra.mxu0 %v490_v14  ;;  %v25_v29 = vld [vmem:[%s801_s1 + $0x60] sm:$0xff]  ;;  %v517_v30 = vpack.c.bf16 %v301_v26, %v300_v25  ;;  %v302_v31 = vld [vmem:[%s801_s1 + $0xd0] sm:$0xff]  ;;  %v303_v32 = vld [vmem:[%s801_s1 + $0xd8] sm:$0xff]  ;;  %s559_s29 = scalar_lea.vmem %s286_s28, 128  ;;  %p564_p1 = scmp.lt.s32.totalorder %s286_s28, %s286_s28 }
   0xd   :  { %492 = vmatprep.subr.bf16.mxu0 %v583_v3  ;;  %v499_v33 = vpack.c.bf16 %v25_v29, %v24_v28  ;;  %v26_v34 = vld [vmem:[%s801_s1 + $0x68] sm:$0xff]  ;;  %v27_v35 = vld [vmem:[%s801_s1 + $0x70] sm:$0xff]  ;;  %v520_v36 = vpack.c.bf16 %v303_v32, %v302_v31  ;;  %v304_v37 = vld [vmem:[%s801_s1 + $0xe0] sm:$0xff]  ;;  %p560_p0 = scmp.ne.s32.totalorder %s286_s28, %s559_s29  ;;  %p565_p2 = scmp.lt.s32.totalorder %s559_s29, %s559_s29 }
   0xe   :  { %515 = vmatpush3.bf16.msra.mxu1 %v514_v24  ;;  %v305_v38 = vld [vmem:[%s801_s1 + $0xe8] sm:$0xff]  ;;  %v502_v39 = vpack.c.bf16 %v27_v35, %v26_v34  ;;  %v28_v40 = vld [vmem:[%s801_s1 + $0x78] sm:$0xff]  ;;  %v29_v41 = vld [vmem:[%s801_s1 + $0x80] sm:$0xff] }
   0xf   :  { %516 = vmatprep.subr.bf16.mxu1 %v583_v3  ;;  %v523_v42 = vpack.c.bf16 %v305_v38, %v304_v37  ;;  %v306_v43 = vld [vmem:[%s801_s1 + $0xf0] sm:$0xff]  ;;  %v307_v44 = vld [vmem:[%s801_s1 + $0xf8] sm:$0xff]  ;;  %v505_v45 = vpack.c.bf16 %v29_v41, %v28_v40  ;;  %v12_v47 = vld [vmem:[%s800_s0] sm:$0xff]  ;;  %p566_p3 = por %p565_p2, %p564_p1 }
  0x10   :  { %494 = vmatpush3.bf16.msra.mxu0 %v493_v21  ;;  %v526_v46 = vpack.c.bf16 %v307_v44, %v306_v43  ;;  %v308_v48 = vld [vmem:[%s801_s1 + $0x100] sm:$0xff]  ;;  %v309_v49 = vld [vmem:[%s801_s1 + $0x108] sm:$0xff]  ;;  %v311_v51 = vld [vmem:[%s801_s1 + $0x118] sm:$0xff] }
  0x11   :  { %495 = vmatprep.subr.bf16.mxu0 %v583_v3  ;;  %v529_v50 = vpack.c.bf16 %v309_v49, %v308_v48  ;;  %v312_v52 = vld [vmem:[%s801_s1 + $0x120] sm:$0xff]  ;;  %v313_v53 = vld [vmem:[%s801_s1 + $0x128] sm:$0xff]  ;;  %v314_v55 = vld [vmem:[%s801_s1 + $0x130] sm:$0xff]  ;;  %p567_p4 = pnand %p566_p3, %p560_p0 }
  0x12   :  { %518 = vmatpush3.bf16.msra.mxu1 %v517_v30  ;;  %v532_v54 = vpack.c.bf16 %v312_v52, %v311_v51  ;;  %v535_v56 = vpack.c.bf16 %v314_v55, %v313_v53  ;;  %v315_v57 = vld [vmem:[%s801_s1 + $0x138] sm:$0xff]  ;;  %v316_v58 = vld [vmem:[%s801_s1 + $0x140] sm:$0xff]  ;;  %v317_v60 = vld [vmem:[%s801_s1 + $0x148] sm:$0xff] }
  0x13   :  { %519 = vmatprep.subr.bf16.mxu1 %v583_v3  ;;  %v538_v59 = vpack.c.bf16 %v316_v58, %v315_v57  ;;  %v318_v61 = vld [vmem:[%s801_s1 + $0x150] sm:$0xff]  ;;  %v319_v63 = vld [vmem:[%s801_s1 + $0x158] sm:$0xff]  ;;  %v320_v0 = vld [vmem:[%s801_s1 + $0x160] sm:$0xff] }
  0x14   :  { %497 = vmatpush3.bf16.msra.mxu0 %v496_v27  ;;  %v541_v62 = vpack.c.bf16 %v318_v61, %v317_v60  ;;  %v544_v1 = vpack.c.bf16 %v320_v0, %v319_v63  ;;  %v321_v2 = vld [vmem:[%s801_s1 + $0x168] sm:$0xff]  ;;  %v322_v4 = vld [vmem:[%s801_s1 + $0x170] sm:$0xff]  ;;  %v324_v7 = vld [vmem:[%s801_s1 + $0x180] sm:$0xff] }
  0x15   :  { %498 = vmatprep.subr.bf16.mxu0 %v583_v3  ;;  %v547_v5 = vpack.c.bf16 %v322_v4, %v321_v2  ;;  %v13_v9 = vld [vmem:[%s801_s1] sm:$0xff]  ;;  %v325_v14 = vld [vmem:[%s801_s1 + $0x188] sm:$0xff]  ;;  %v326_v15 = vld [vmem:[%s801_s1 + $0x190] sm:$0xff] }
  0x16   :  { %521 = vmatpush3.bf16.msra.mxu1 %v520_v36  ;;  %v553_v16 = vpack.c.bf16 %v326_v15, %v325_v14  ;;  %v310_v21 = vld [vmem:[%s801_s1 + $0x110] sm:$0xff] }
  0x17   :  { %522 = vmatprep.subr.bf16.mxu1 %v583_v3 }
  0x18   :  { %500 = vmatpush3.bf16.msra.mxu0 %v499_v33 }
  0x19   :  { %501 = vmatprep.subr.bf16.mxu0 %v583_v3 }
  0x1a   :  { %524 = vmatpush3.bf16.msra.mxu1 %v523_v42 }
  0x1b   :  { %525 = vmatprep.subr.bf16.mxu1 %v583_v3 }
  0x1c   :  { %503 = vmatpush3.bf16.msra.mxu0 %v502_v39 }
  0x1d   :  { %504 = vmatprep.subr.bf16.mxu0 %v583_v3 }
  0x1e   :  { %527 = vmatpush3.bf16.msra.mxu1 %v526_v46 }
  0x1f   :  { %528 = vmatprep.subr.bf16.mxu1 %v583_v3 }
  0x20   :  { %506 = vmatpush3.bf16.msra.mxu0 %v505_v45 }
  0x21   :  { %531 = vmatprep.subr.bf16.mxu0 %v583_v3 }
  0x22   :  { %530 = vmatpush3.bf16.msra.mxu1 %v529_v50 }
  0x23   :  { %411 = vmatmul.mubr.f32.vlgmr.msra.gmra.mrb[0].mxu0 %v12_v47 }
  0x24   :  { %480 = vmatprep.mubr.msk.f32.mxu0 %vm584_vm0, %v585_v6  ;;  %533 = vmatpush3.bf16.msra.mxu0 %v532_v54  ;;  %v323_v6 = vld [vmem:[%s801_s1 + $0x178] sm:$0xff] }
  0x25   :  { %534 = vmatprep.subr.bf16.mxu0 %v583_v3  ;;  %v550_v8 = vpack.c.bf16 %v324_v7, %v323_v6 }
  0x28   :  { %536 = vmatpush3.bf16.msra.mxu0 %v535_v56 }
  0x29   :  { %537 = vmatprep.subr.bf16.mxu0 %v583_v3 }
  0x2c   :  { %539 = vmatpush3.bf16.msra.mxu0 %v538_v59 }
  0x2d   :  { %540 = vmatprep.subr.bf16.mxu0 %v583_v3 }
  0x30   :  { %542 = vmatpush3.bf16.msra.mxu0 %v541_v62 }
  0x31   :  { %543 = vmatprep.subr.bf16.mxu0 %v583_v3 }
  0x34   :  { %545 = vmatpush3.bf16.msra.mxu0 %v544_v1 }
  0x35   :  { %546 = vmatprep.subr.bf16.mxu0 %v583_v3 }
  0x38   :  { %548 = vmatpush3.bf16.msra.mxu0 %v547_v5 }
  0x39   :  { %549 = vmatprep.subr.bf16.mxu0 %v583_v3 }
  0x3c   :  { %551 = vmatpush3.bf16.msra.mxu0 %v550_v8 }
  0x3d   :  { %552 = vmatprep.subr.bf16.mxu0 %v583_v3  ;;  %v293_v3 = vld [vmem:[%s801_s1 + $0x88] sm:$0xff] }
  0x40   :  { %554 = vmatpush3.bf16.msra.mxu0 %v553_v16 }
  0xf6   :  { %v96_v10 = vpop.f32.mrb[0].mxu0 }
  0xf7   :  { %v97_v11 = vadd.f32 %v96_v10, %v13_v9  ;;  %v412_v12 = vpop.f32.mrb[1].mxu0 }
  0xf9   :  { %v100_v13 = vmax.f32 %v97_v11, 0.0 }
  0xfb   :  { %446 = vmatmul.mubr.f32.vlgmr.msra.gmra.mrb[0].mxu1 %v100_v13 }
 0x1ce   :  { %v185_v17 = vpop.f32.mrb[0].mxu1 }
 0x1cf   :  { %v186_v18 = vadd.f32 %v293_v3, %v185_v17  ;;  %v447_v19 = vpop.f32.mrb[1].mxu1 }
 0x1d1   :  { %v189_v20 = vmax.f32 %v186_v18, 0.0 }
 0x1d3   :  { %481 = vmatmul.mubr.f32.vlgmr.msra.gmra.mrb[2].mxu0 %v189_v20 }
 0x2a6   :  { %v274_v22 = vpop.f32.mrb[2].mxu0 }
 0x2a7   :  { %v275_v23 = vadd.f32 %v310_v21, %v274_v22  ;;  %v482_v24 = vpop.f32.mrb[3].mxu0 }
 0x2a9   :  { %278 = vst [vmem:[#allocation2] sm:$0xff] %v275_v23 }
 0x2aa   :  { %570 = shalt.err (!%p567_p4)
}
 0x2ab   :  { %s571_s4 = scalar_lea.hbm %s802_s2, 128 }
 0x2ac   :  { %p572_p5 = scmp.ne.s32.totalorder %s802_s2, %s571_s4  ;;  %p575_p6 = scmp.lt.u32.totalorder %s571_s4, %s802_s2 }
 0x2ae   :  { %p577_p7 = pnand %p575_p6, %p572_p5 }
 0x2b0   :  { %580 = shalt.err (!%p577_p7)
}
 0x2b1   :  { %288 = dma.vmem_to_hbm [thread:$0]  %s286_s28, 128, %s802_s2, [#allocation3]  }
 0x2b2   :  { %581 = dma.done.wait [#allocation3], 128  }
 0x2b3   :  { %582 = vsyncadd [#allocation3], 4294967168 }
 0x2b4   :  { %292 = vsyncpa [#allocation3], 1 }

</bundles_post_ra>
